<compile_context>
chip_gen: v7x
topology: tpu7x:2x2x1
jax: 0.10.0
libtpu: 0.0.40
codegen_flags: <defaults>
</compile_context>

<pallas_src>
import functools

import jax
import jax.numpy as jnp
from jax import lax
from jax.experimental import pallas as pl
from jax.experimental.pallas import tpu as pltpu

EPS = 1e-5  # nn.LayerNorm default


def _patch_embed_kernel(x_ref, w_ref, b_ref, g_ref, beta_ref, o_ref, *,
                        apply_norm, eps):
    # x_ref: (TM, K) bf16 patches   w_ref: (K, E) bf16 (resident across grid)
    # b_ref/g_ref/beta_ref: (1, E) f32   o_ref: (TM, E) out_dtype
    y = jnp.dot(x_ref[...], w_ref[...], preferred_element_type=jnp.float32)
    y = y + b_ref[...].astype(jnp.float32)

    if apply_norm:
        # One-pass LayerNorm stats over E (biased variance, like nn.LayerNorm).
        mean = jnp.mean(y, axis=-1, keepdims=True)
        msq = jnp.mean(y * y, axis=-1, keepdims=True)
        var = jnp.maximum(msq - mean * mean, 0.0)  # guard f32 cancellation
        y = (y - mean) * lax.rsqrt(var + eps)
        y = y * g_ref[...].astype(jnp.float32) + beta_ref[...].astype(jnp.float32)

    o_ref[...] = y.astype(o_ref.dtype)


def patch_embed_forward(x, proj_weight, proj_bias, gamma=None, beta=None, *,
                        patch_size=4, eps=EPS, tm=4096,
                        compute_dtype=jnp.bfloat16, out_dtype=jnp.bfloat16):
    """x: (B, C, H, W). Returns (B, Ho*Wo, embed_dim) like PatchEmbed.forward."""
    B, C, H, W = x.shape
    p = patch_size
    assert H % p == 0 and W % p == 0, (
        f"Input image size ({H}*{W}) not divisible by patch {p}")
    Ho, Wo = H // p, W // p
    E = proj_weight.shape[0]
    K = C * p * p
    M = B * Ho * Wo

    # --- patchify: (B,C,H,W) -> (B,Ho,Wo,C,p,p) -> (M,K); the bf16 cast is
    # fused into the same XLA transpose so the kernel's dominant HBM read is
    # half-width.  allow_input_fusion below lets XLA fold this producer into
    # the pallas_call operand instead of materializing a separate HBM buffer.
    # TODO(synk): a fully in-kernel patch gather (BlockSpecs over the raw NCHW
    # image + in-kernel (C,p,p)->K regroup) would remove this pass entirely but
    # needs an in-kernel relayout that Mosaic does not lower cleanly today.
    xp = x.reshape(B, C, Ho, p, Wo, p).transpose(0, 2, 4, 1, 3, 5)
    xp = xp.reshape(M, K).astype(compute_dtype)

    # Projection weight folded once to (K, E); constant index_map keeps it
    # resident in VMEM across the whole grid (no re-DMA per step).
    w2d = proj_weight.reshape(E, K).T.astype(compute_dtype)
    b2d = proj_bias.reshape(1, E).astype(jnp.float32)

    apply_norm = gamma is not None
    if apply_norm:
        g2d = gamma.reshape(1, E).astype(jnp.float32)
        be2d = beta.reshape(1, E).astype(jnp.float32)
    else:
        g2d = jnp.ones((1, E), jnp.float32)
        be2d = jnp.zeros((1, E), jnp.float32)

    cbytes = jnp.dtype(compute_dtype).itemsize
    obytes = jnp.dtype(out_dtype).itemsize

    # --- row-tile selection --------------------------------------------------
    # Per-step compute is ~1 MFLOP, so big tiles amortize the fixed per-step
    # overhead; but keep grid_m >= 2 when possible so dimension_semantics
    # ("parallel",) can shard steps across v7x's two TensorCores.
    tm_eff = min(tm, M)
    if M >= 16:
        tm_eff = min(tm_eff, (M + 1) // 2)
    # VMEM cap: double-buffered in/out tiles + resident weight must stay well
    # under the 32 MiB scoped limit (v7x total VMEM is only 64 MiB).
    per_row_bytes = 2 * (K * cbytes + E * obytes)
    budget = (24 << 20) - K * E * cbytes
    tm_eff = min(tm_eff, max(16, budget // max(per_row_bytes, 1)))
    tm_eff = max(16, ((tm_eff + 15) // 16) * 16)  # bf16 sublane packing
    grid_m = pl.cdiv(M, tm_eff)  # partial last block: clipped read, masked write

    vmem_bytes = (2 * tm_eff * K * cbytes + 2 * tm_eff * E * obytes
                  + K * E * cbytes + 3 * E * 4 + (1 << 20))
    vmem_bytes = int(min(max(vmem_bytes, 2 << 20), 32 << 20))

    kernel = functools.partial(_patch_embed_kernel, apply_norm=apply_norm, eps=eps)

    out = pl.pallas_call(
        kernel,
        out_shape=jax.ShapeDtypeStruct((M, E), out_dtype),
        grid_spec=pltpu.PrefetchScalarGridSpec(
            num_scalar_prefetch=0,
            grid=(grid_m,),
            in_specs=[
                pl.BlockSpec((tm_eff, K), lambda i: (i, 0)),
                pl.BlockSpec((K, E), lambda i: (0, 0)),
                pl.BlockSpec((1, E), lambda i: (0, 0)),
                pl.BlockSpec((1, E), lambda i: (0, 0)),
                pl.BlockSpec((1, E), lambda i: (0, 0)),
            ],
            out_specs=pl.BlockSpec((tm_eff, E), lambda i: (i, 0)),
        ),
        compiler_params=pltpu.CompilerParams(
            dimension_semantics=("parallel",),
            vmem_limit_bytes=vmem_bytes,
            # Let XLA fuse the im2col transpose/cast producer into operand 0.
            allow_input_fusion=[True, False, False, False, False],
        ),
        cost_estimate=pl.CostEstimate(
            flops=2 * M * K * E,
            transcendentals=M if apply_norm else 0,
            bytes_accessed=(M * K * cbytes + K * E * cbytes
                            + M * E * obytes + 3 * E * 4),
        ),
    )(xp, w2d, b2d, g2d, be2d)

    return out.reshape(B, Ho * Wo, E)


def _reference_forward(x, proj_weight, proj_bias, gamma, beta, *,
                       patch_size, eps=EPS, compute_dtype=None):
    """Reference using a real strided conv (mirrors the PyTorch module).

    If compute_dtype is given, x and the weight are rounded to it first so the
    reference matches the kernel's bf16-operand / f32-accumulate matmul path.
    """
    p = patch_size
    if compute_dtype is not None:
        xc = x.astype(compute_dtype).astype(jnp.float32)
        wc = proj_weight.astype(compute_dtype).astype(jnp.float32)
    else:
        xc = x.astype(jnp.float32)
        wc = proj_weight.astype(jnp.float32)

    y = lax.conv_general_dilated(
        xc, wc, window_strides=(p, p), padding="VALID",
        dimension_numbers=("NCHW", "OIHW", "NCHW"))
    y = y + proj_bias.astype(jnp.float32).reshape(1, -1, 1, 1)
    B, E, Ho, Wo = y.shape
    y = y.reshape(B, E, Ho * Wo).transpose(0, 2, 1)  # (B, L, E)

    if gamma is not None:
        mean = jnp.mean(y, axis=-1, keepdims=True)
        var = jnp.mean((y - mean) ** 2, axis=-1, keepdims=True)
        y = (y - mean) / jnp.sqrt(var + eps)
        y = y * gamma.astype(jnp.float32) + beta.astype(jnp.float32)
    return y


if __name__ == "__main__":
    # Small shapes consistent with the module defaults: in_chans=3, patch=4,
    # embed_dim=96, norm_layer=LayerNorm; img_size shrunk to 64, batch 2.
    B, C, H, W = 2, 3, 64, 64
    patch_size = 4
    embed_dim = 96

    key = jax.random.PRNGKey(0)
    kx, kw, kb, kg, kbe = jax.random.split(key, 5)

    x = jax.random.normal(kx, (B, C, H, W), dtype=jnp.float32)
    proj_weight = 0.02 * jax.random.normal(
        kw, (embed_dim, C, patch_size, patch_size), dtype=jnp.float32)
    proj_bias = 0.02 * jax.random.normal(kb, (embed_dim,), dtype=jnp.float32)
    gamma = 1.0 + 0.02 * jax.random.normal(kg, (embed_dim,), dtype=jnp.float32)
    beta = 0.02 * jax.random.normal(kbe, (embed_dim,), dtype=jnp.float32)

    out = patch_embed_forward(x, proj_weight, proj_bias, gamma, beta,
                              patch_size=patch_size)
    out = jax.block_until_ready(out)

    Ho, Wo = H // patch_size, W // patch_size
    assert out.shape == (B, Ho * Wo, embed_dim), out.shape
    assert out.dtype == jnp.bfloat16, out.dtype

    ref = _reference_forward(x, proj_weight, proj_bias, gamma, beta,
                             patch_size=patch_size, compute_dtype=jnp.bfloat16)
    assert jnp.allclose(out.astype(jnp.float32), ref, atol=2e-2, rtol=2e-2), (
        "mismatch vs reference")

    # Also exercise the no-norm path (norm_layer=None in the module).
    out2 = patch_embed_forward(x, proj_weight, proj_bias, None, None,
                               patch_size=patch_size)
    out2 = jax.block_until_ready(out2)
    ref2 = _reference_forward(x, proj_weight, proj_bias, None, None,
                              patch_size=patch_size, compute_dtype=jnp.bfloat16)
    assert jnp.allclose(out2.astype(jnp.float32), ref2, atol=2e-2, rtol=2e-2), (
        "mismatch vs reference (no norm)")

    print("KERNEL_OK")
</pallas_src>

<mosaic_0001>
module attributes {stable_mosaic.version = 11 : i64} {
  func.func @_patch_embed_kernel(%arg0: i32, %arg1: memref<256x48xbf16, #tpu.memory_space<vmem>>, %arg2: memref<48x96xbf16, #tpu.memory_space<vmem>>, %arg3: memref<1x96xf32, #tpu.memory_space<vmem>>, %arg4: memref<1x96xf32, #tpu.memory_space<vmem>>, %arg5: memref<1x96xf32, #tpu.memory_space<vmem>>, %arg6: memref<256x96xbf16, #tpu.memory_space<vmem>>) attributes {dimension_semantics = [#tpu.dimension_semantics<parallel>], iteration_bounds = array<i64: 2>, scalar_prefetch = 0 : i64, scratch_operands = 0 : i64, tpu.core_type = #tpu.core_type<tc>, window_params = [{transform_indices = @transform_0, window_bounds = array<i64: 256, 48>}, {pipeline_mode = #tpu.pipeline_mode<synchronous>, transform_indices = @transform_1, window_bounds = array<i64: 48, 96>}, {pipeline_mode = #tpu.pipeline_mode<synchronous>, transform_indices = @transform_2, window_bounds = array<i64: 1, 96>}, {pipeline_mode = #tpu.pipeline_mode<synchronous>, transform_indices = @transform_3, window_bounds = array<i64: 1, 96>}, {pipeline_mode = #tpu.pipeline_mode<synchronous>, transform_indices = @transform_4, window_bounds = array<i64: 1, 96>}, {transform_indices = @transform_5, window_bounds = array<i64: 256, 96>}]} {
    %c0 = arith.constant 0 : index
    %c0_0 = arith.constant 0 : index
    %0 = vector.load %arg1[%c0, %c0_0] : memref<256x48xbf16, #tpu.memory_space<vmem>>, vector<256x48xbf16>
    %c0_1 = arith.constant 0 : index
    %c0_2 = arith.constant 0 : index
    %1 = vector.load %arg2[%c0_1, %c0_2] : memref<48x96xbf16, #tpu.memory_space<vmem>>, vector<48x96xbf16>
    %cst = arith.constant dense<0.000000e+00> : vector<256x96xf32>
    %2 = tpu.matmul %0, %1, %cst {dimension_numbers = #tpu.dot_dimension_numbers<[1], [0], [0], [1], [0, 0, 1, 1], [], []>} : vector<256x48xbf16>, vector<48x96xbf16>, vector<256x96xf32> -> vector<256x96xf32>
    %c0_3 = arith.constant 0 : index
    %c0_4 = arith.constant 0 : index
    %3 = vector.load %arg3[%c0_3, %c0_4] : memref<1x96xf32, #tpu.memory_space<vmem>>, vector<1x96xf32>
    %4 = vector.broadcast %3 : vector<1x96xf32> to vector<256x96xf32>
    %5 = arith.addf %2, %4 : vector<256x96xf32>
    %cst_5 = arith.constant dense<0.000000e+00> : vector<256xf32>
    %6 = vector.multi_reduction <add>, %5, %cst_5 [1] : vector<256x96xf32> to vector<256xf32>
    %7 = vector.shape_cast %6 : vector<256xf32> to vector<256x1xf32>
    %cst_6 = arith.constant 9.600000e+01 : f32
    %8 = vector.broadcast %cst_6 : f32 to vector<256x1xf32>
    %9 = arith.divf %7, %8 : vector<256x1xf32>
    %10 = arith.mulf %5, %5 : vector<256x96xf32>
    %cst_7 = arith.constant dense<0.000000e+00> : vector<256xf32>
    %11 = vector.multi_reduction <add>, %10, %cst_7 [1] : vector<256x96xf32> to vector<256xf32>
    %12 = vector.shape_cast %11 : vector<256xf32> to vector<256x1xf32>
    %cst_8 = arith.constant 9.600000e+01 : f32
    %13 = vector.broadcast %cst_8 : f32 to vector<256x1xf32>
    %14 = arith.divf %12, %13 : vector<256x1xf32>
    %15 = arith.mulf %9, %9 : vector<256x1xf32>
    %16 = arith.subf %14, %15 : vector<256x1xf32>
    %cst_9 = arith.constant 0.000000e+00 : f32
    %17 = vector.broadcast %cst_9 : f32 to vector<256x1xf32>
    %18 = arith.maximumf %16, %17 : vector<256x1xf32>
    %19 = vector.broadcast %9 : vector<256x1xf32> to vector<256x96xf32>
    %20 = arith.subf %5, %19 : vector<256x96xf32>
    %cst_10 = arith.constant 9.99999974E-6 : f32
    %21 = vector.broadcast %cst_10 : f32 to vector<256x1xf32>
    %22 = arith.addf %18, %21 : vector<256x1xf32>
    %23 = math.rsqrt %22 : vector<256x1xf32>
    %24 = vector.broadcast %23 : vector<256x1xf32> to vector<256x96xf32>
    %25 = arith.mulf %20, %24 : vector<256x96xf32>
    %c0_11 = arith.constant 0 : index
    %c0_12 = arith.constant 0 : index
    %26 = vector.load %arg4[%c0_11, %c0_12] : memref<1x96xf32, #tpu.memory_space<vmem>>, vector<1x96xf32>
    %27 = vector.broadcast %26 : vector<1x96xf32> to vector<256x96xf32>
    %28 = arith.mulf %25, %27 : vector<256x96xf32>
    %c0_13 = arith.constant 0 : index
    %c0_14 = arith.constant 0 : index
    %29 = vector.load %arg5[%c0_13, %c0_14] : memref<1x96xf32, #tpu.memory_space<vmem>>, vector<1x96xf32>
    %30 = vector.broadcast %29 : vector<1x96xf32> to vector<256x96xf32>
    %31 = arith.addf %28, %30 : vector<256x96xf32>
    %32 = arith.truncf %31 : vector<256x96xf32> to vector<256x96xbf16>
    %c0_15 = arith.constant 0 : index
    %c0_16 = arith.constant 0 : index
    %33 = vector.load %arg6[%c0_15, %c0_16] : memref<256x96xbf16, #tpu.memory_space<vmem>>, vector<256x96xbf16>
    tpu.vector_store %arg6[%c0_15, %c0_16], %32 {strides = array<i32>} : memref<256x96xbf16, #tpu.memory_space<vmem>>, vector<256x96xbf16>,
    return
  }
  func.func @transform_0(%arg0: i32) -> (i32, i32) {
    %c0_i32 = arith.constant 0 : i32
    %c0_i32_0 = arith.constant 0 : i32
    return %arg0, %c0_i32 : i32, i32
  }
  func.func @transform_1(%arg0: i32) -> (i32, i32) {
    %c0_i32 = arith.constant 0 : i32
    %c0_i32_0 = arith.constant 0 : i32
    %c0_i32_1 = arith.constant 0 : i32
    return %c0_i32, %c0_i32_0 : i32, i32
  }
  func.func @transform_2(%arg0: i32) -> (i32, i32) {
    %c0_i32 = arith.constant 0 : i32
    %c0_i32_0 = arith.constant 0 : i32
    %c0_i32_1 = arith.constant 0 : i32
    return %c0_i32, %c0_i32_0 : i32, i32
  }
  func.func @transform_3(%arg0: i32) -> (i32, i32) {
    %c0_i32 = arith.constant 0 : i32
    %c0_i32_0 = arith.constant 0 : i32
    %c0_i32_1 = arith.constant 0 : i32
    return %c0_i32, %c0_i32_0 : i32, i32
  }
  func.func @transform_4(%arg0: i32) -> (i32, i32) {
    %c0_i32 = arith.constant 0 : i32
    %c0_i32_0 = arith.constant 0 : i32
    %c0_i32_1 = arith.constant 0 : i32
    return %c0_i32, %c0_i32_0 : i32, i32
  }
  func.func @transform_5(%arg0: i32) -> (i32, i32) {
    %c0_i32 = arith.constant 0 : i32
    %c0_i32_0 = arith.constant 0 : i32
    return %arg0, %c0_i32 : i32, i32
  }
}

</mosaic_0001>

<bundles_post_ra>
// kernel: tpu_custom_call.1
= control target key start
LH: loop header
LB: loop body
LE: loop exit
PB: predicated region body
PF: predicated region fallthrough
CT: control target
= control target key end

     0   :  { %s1696_s18 = smov 0   ;;  %s2381_s0 = inlined_call_operand.vmem [shape: bf16[512,48], index: 0, kind: input, shape index: {}]   ;;  %s2382_s1 = inlined_call_operand.vmem [shape: bf16[48,96], index: 1, kind: input, shape index: {}]   ;;  %s2383_s2 = inlined_call_operand.vmem [shape: f32[1,96], index: 2, kind: input, shape index: {}]   ;;  %s2384_s3 = inlined_call_operand.vmem [shape: f32[1,96], index: 3, kind: input, shape index: {}]   ;;  %s2385_s4 = inlined_call_operand.vmem [shape: f32[1,96], index: 4, kind: input, shape index: {}]   ;;  %s2386_s5 = inlined_call_operand.vmem [shape: bf16[512,96], index: 5, kind: output, shape index: {}]  }
   0x1 LB: > { %s1391_s19 = sadd.s32 4294967295, %s1664_s18   ;;  %p1395_p0 = scmp.ge.s32.totalorder %s1664_s18, 1  ;;  %s1664_s18 = sphi %s1696_s18, %s15_s18  }
   0x2   : > { %p188_p1 = scmp.lt.s32.totalorder %s1664_s18, 3 }
   0x4   : > { %p189_p2 = pnand %p1395_p0, %p188_p1 }
   0x5   : > { %v1575_v0 = vld [vmem:[%s2382_s1] sm:$0xff] (!%p189_p2)   ;;  %s1396_s22 = sshll.u32 (!%p189_p2), %s1391_s19, 5  ;;  %v1576_v1 = vld [vmem:[%s2382_s1 + $0x8] sm:$0xff] (!%p189_p2)   ;;  %v1577_v2 = vld [vmem:[%s2382_s1 + $0x10] sm:$0xff] (!%p189_p2)   ;;  %vm372_vm0 = vcmask (!%p189_p2), 392192   ;;  %vm582_vm1 = vcmask (!%p189_p2), 785408  }
   0x6   : > { %192 = sbr.rel (%p189_p2) target bundleno = 528 (0x210), region = 40  ;;  %p217_p3 = scmp.lt.s32.totalorder (!%p189_p2), %s1396_s22, 63  ;;  %1523 = vmatprep.subr.bf16.mxu0 (!%p189_p2), %v1575_v0  ;;  %1561 = vmatprep.subr.bf16.mxu1 (!%p189_p2), %v1575_v0  ;;  %v1758_v19 = vld [vmem:[%s2383_s2] ss:$0 sm:$0xff] (!%p189_p2)  ;;  %vm1302_vm2 = vcmask (!%p189_p2), 781312  }
   0x7   : > { %1524 = vmatpush3.bf16.msra.mxu0 (!%p189_p2), %v1575_v0  ;;  %1564 = vmatpush3.bf16.msra.mxu1 (!%p189_p2), %v1575_v0 }
   0x8   : > { %1525 = vmatprep.subr.bf16.mxu0 (!%p189_p2), %v1576_v1  ;;  %1562 = vmatprep.subr.bf16.mxu1 (!%p189_p2), %v1576_v1 }
   0xb   : > { %1526 = vmatpush3.bf16.msra.mxu0 (!%p189_p2), %v1576_v1  ;;  %1565 = vmatpush3.bf16.msra.mxu1 (!%p189_p2), %v1576_v1 }
   0xc   : > { %1527 = vmatprep.subr.bf16.mxu0 (!%p189_p2), %v1577_v2  ;;  %1563 = vmatprep.subr.bf16.mxu1 (!%p189_p2), %v1577_v2 }
   0xd   : > { %s2388_s22 = smov (!%p217_p3, %s1396_s22), 63 }
   0xe   : > { %s1397_s27 = sshll.u32 %s2388_s22, 2 }
   0xf   : > { %s1721_s30 = scalar_lea.vmem %s2381_s0, %s1397_s27  ;;  %1528 = vmatpush3.bf16.msra.mxu0 %v1577_v2  ;;  %1566 = vmatpush3.bf16.msra.mxu1 %v1577_v2  ;;  %s2090_s14 = scalar_lea.vmem %s2386_s5, %s1397_s27 }
  0x10   : > { %v1578_v3 = vld [vmem:[%s1721_s30] sm:$0xff]   ;;  %v1580_v5 = vld [vmem:[%s1721_s30 + $0x8] sm:$0xff]   ;;  %v1582_v7 = vld [vmem:[%s1721_s30 + $0x10] sm:$0xff]  }
  0x11   : > { %v1579_v4 = vld [vmem:[%s1721_s30 + $0x40] sm:$0xff]   ;;  %1529 = vmatprep.mubr.msk.bf16.mxu0 %vm372_vm0, %v1578_v3  ;;  %v1581_v6 = vld [vmem:[%s1721_s30 + $0x48] sm:$0xff]   ;;  %v1584_v8 = vld [vmem:[%s1721_s30 + $0x50] sm:$0xff]  }
  0x12   : > { %1545 = vmatprep.mubr.msk.bf16.mxu1 %vm372_vm0, %v1579_v4  ;;  %1530 = vmatmul.mubr.msk.bf16.vlgmr.msra.gmra.mrb[0].mxu0 %vm372_vm0, %v1580_v5  ;;  %v1583_v9 = vld [vmem:[%s1721_s30 + $0x18] sm:$0xff]   ;;  %v1586_v11 = vld [vmem:[%s1721_s30 + $0x20] sm:$0xff]   ;;  %v1587_v13 = vld [vmem:[%s1721_s30 + $0x28] sm:$0xff]  }
  0x13   : > { %1546 = vmatmul.mubr.msk.bf16.vlgmr.msra.gmra.mrb[0].mxu1 %vm372_vm0, %v1581_v6  ;;  %1533 = vmatprep.mubr.msk.bf16.mxu0 %vm372_vm0, %v1582_v7  ;;  %v1585_v10 = vld [vmem:[%s1721_s30 + $0x58] sm:$0xff]   ;;  %v1588_v12 = vld [vmem:[%s1721_s30 + $0x60] sm:$0xff]   ;;  %v1589_v14 = vld [vmem:[%s1721_s30 + $0x68] sm:$0xff]  }
  0x14   : > { %1549 = vmatprep.mubr.msk.bf16.mxu1 %vm372_vm0, %v1584_v8  ;;  %v1590_v15 = vld [vmem:[%s1721_s30 + $0x30] sm:$0xff]   ;;  %v1591_v17 = vld [vmem:[%s1721_s30 + $0x38] sm:$0xff]  }
  0x15   : > { %v1592_v16 = vld [vmem:[%s1721_s30 + $0x70] sm:$0xff]   ;;  %v1593_v18 = vld [vmem:[%s1721_s30 + $0x78] sm:$0xff]  }
  0x1a   : > { %1534 = vmatmul.mubr.msk.bf16.gmra.mrb[4].mxu0 %vm372_vm0, %v1583_v9 }
  0x1b   : > { %1550 = vmatmul.mubr.msk.bf16.gmra.mrb[4].mxu1 %vm372_vm0, %v1585_v10  ;;  %1537 = vmatprep.mubr.msk.bf16.mxu0 %vm372_vm0, %v1586_v11 }
  0x1c   : > { %1553 = vmatprep.mubr.msk.bf16.mxu1 %vm372_vm0, %v1588_v12 }
  0x22   : > { %1538 = vmatmul.mubr.msk.bf16.gmra.mrb[8].mxu0 %vm372_vm0, %v1587_v13 }
  0x23   : > { %1554 = vmatmul.mubr.msk.bf16.gmra.mrb[8].mxu1 %vm372_vm0, %v1589_v14  ;;  %1541 = vmatprep.mubr.msk.bf16.mxu0 %vm372_vm0, %v1590_v15 }
  0x24   : > { %1557 = vmatprep.mubr.msk.bf16.mxu1 %vm372_vm0, %v1592_v16 }
  0x2a   : > { %1542 = vmatmul.mubr.msk.bf16.gmra.mrb[12].mxu0 %vm372_vm0, %v1591_v17 }
  0x2b   : > { %1558 = vmatmul.mubr.msk.bf16.gmra.mrb[12].mxu1 %vm372_vm0, %v1593_v18 }
  0xe5   : > { %v1531_v20 = vpop.f32.mrb[0].mxu0 }
  0xe6   : > { %v1547_v21 = vpop.f32.mrb[0].mxu1  ;;  %v1761_v22 = vadd.f32 %v1531_v20, %v1758_v19  ;;  %v455_v24 = vpop.f32.mrb[1].mxu0 }
  0xe7   : > { %v1764_v23 = vadd.f32 %v1547_v21, %v1758_v19  ;;  %v519_v25 = vpop.f32.mrb[1].mxu1  ;;  %v1532_v26 = vpop.f32.mrb[2].mxu0  ;;  %v1767_v28 = vadd.f32 %v1758_v19, %v455_v24 }
  0xe8   : > { %v1548_v27 = vpop.f32.mrb[2].mxu1  ;;  %v1770_v29 = vadd.f32 %v1532_v26, %v1758_v19  ;;  %v458_v30 = vpop.f32.mrb[3].mxu0  ;;  %v589_v33 = vsel %vm582_vm1, %v1761_v22, 0.0  ;;  %v1777_v34 = vadd.f32 %v1758_v19, %v519_v25  ;;  %v714_v47 = vmul.f32 %v1761_v22, %v1761_v22 }
  0xe9   : > { %v522_v31 = vpop.f32.mrb[3].mxu1  ;;  %v637_v32 = vsel %vm582_vm1, %v1764_v23, 0.0  ;;  %590 = vadd.xlane.f32.xlu1 %v589_v33  ;;  %v1780_v35 = vadd.f32 %v1548_v27, %v1758_v19  ;;  %v583_v37 = vsel %vm582_vm1, %v1767_v28, 0.0  ;;  %v730_v53 = vmul.f32 %v1764_v23, %v1764_v23 }
  0xea   : > { %638 = vadd.xlane.f32.xlu0 %v637_v32  ;;  %v592_v36 = vsel %vm582_vm1, %v1770_v29, 0.0  ;;  %v1799_v44 = vadd.f32 %v1758_v19, %v522_v31  ;;  %v631_v46 = vsel %vm582_vm1, %v1777_v34, 0.0  ;;  %v750_v51 = vsel %vm582_vm1, %v714_v47, 0.0 }
  0xeb   : > { %v640_v45 = vsel %vm582_vm1, %v1780_v35, 0.0  ;;  %v715_v52 = vmul.f32 %v1770_v29, %v1770_v29  ;;  %v1825_v60 = vadd.f32 %v1758_v19, %v458_v30  ;;  %v731_v61 = vmul.f32 %v1780_v35, %v1780_v35 }
  0xec   : > { %v634_v50 = vsel %vm582_vm1, %v1799_v44, 0.0  ;;  %v798_v3 = vsel %vm582_vm1, %v730_v53, 0.0  ;;  %v712_v13 = vmul.f32 %v1767_v28, %v1767_v28  ;;  %v729_v21 = vmul.f32 %v1799_v44, %v1799_v44 }
  0xed   : > { %593 = vadd.xlane.f32.xlu1 %v592_v36  ;;  %v1786_v38 = vpop.f32.mrb[4].mxu0  ;;  %v753_v2 = vsel %vm582_vm1, %v715_v52, 0.0  ;;  %v801_v10 = vsel %vm582_vm1, %v731_v61, 0.0  ;;  %v586_v11 = vsel %vm582_vm1, %v1825_v60, 0.0  ;;  %v713_v12 = vmul.f32 %v1825_v60, %v1825_v60 }
  0xee   : > { %584 = vadd.xlane.f32.xlu0 %v583_v37  ;;  %v1788_v39 = vpop.f32.mrb[4].mxu1  ;;  %v1790_v40 = vpop.f32.mrb[5].mxu0  ;;  %v728_v24 = vmul.f32 %v1777_v34, %v1777_v34  ;;  %v744_v32 = vsel %vm582_vm1, %v712_v13, 0.0  ;;  %v795_v52 = vsel %vm582_vm1, %v729_v21, 0.0 }
  0xef   : > { %v1792_v41 = vpop.f32.mrb[5].mxu1  ;;  %v1794_v42 = vpop.f32.mrb[6].mxu0  ;;  %v747_v31 = vsel %vm582_vm1, %v713_v12, 0.0 }
  0xf0   : > { %v1796_v43 = vpop.f32.mrb[6].mxu1  ;;  %v1807_v48 = vpop.f32.mrb[7].mxu0  ;;  %v792_v53 = vsel %vm582_vm1, %v728_v24, 0.0  ;;  %v1922_v61 = vadd.f32 %v1758_v19, %v1792_v41 }
  0xf1   : > { %v1809_v49 = vpop.f32.mrb[7].mxu1  ;;  %641 = vadd.xlane.f32.xlu1 %v640_v45 }
  0xf2   : > { %632 = vadd.xlane.f32.xlu0 %v631_v46 }
  0xf5   : > { %635 = vadd.xlane.f32.xlu1 %v634_v50  ;;  %v1539_v54 = vpop.f32.mrb[8].mxu0  ;;  %v1888_v50 = vadd.f32 %v1786_v38, %v1758_v19 }
  0xf6   : > { %751 = vadd.xlane.f32.xlu0 %v750_v51  ;;  %v1555_v55 = vpop.f32.mrb[8].mxu1  ;;  %v1819_v56 = vadd.f32 %v1539_v54, %v1758_v19  ;;  %v487_v57 = vpop.f32.mrb[9].mxu0  ;;  %v1892_v51 = vadd.f32 %v1794_v42, %v1758_v19  ;;  %v1898_v54 = vadd.f32 %v1788_v39, %v1758_v19  ;;  %v1914_v39 = vadd.f32 %v1758_v19, %v1807_v48 }
  0xf7   : > { %v1822_v58 = vadd.f32 %v1555_v55, %v1758_v19  ;;  %v551_v59 = vpop.f32.mrb[9].mxu1  ;;  %v1830_v62 = vadd.f32 %v1758_v19, %v487_v57  ;;  %v1540_v63 = vpop.f32.mrb[10].mxu0  ;;  %v1902_v55 = vadd.f32 %v1796_v43, %v1758_v19  ;;  %v601_v42 = vsel %vm582_vm1, %v1888_v50, 0.0 }
  0xf8   : > { %v1833_v0 = vadd.f32 %v1758_v19, %v551_v59  ;;  %v1556_v1 = vpop.f32.mrb[10].mxu1  ;;  %v1838_v4 = vadd.f32 %v1540_v63, %v1758_v19  ;;  %v490_v5 = vpop.f32.mrb[11].mxu0  ;;  %v604_v38 = vsel %vm582_vm1, %v1892_v51, 0.0  ;;  %v1910_v57 = vadd.f32 %v1758_v19, %v1790_v40 }
  0xf9   : > { %v1841_v6 = vadd.f32 %v1556_v1, %v1758_v19  ;;  %v554_v7 = vpop.f32.mrb[11].mxu1  ;;  %754 = vadd.xlane.f32.xlu1 %v753_v2  ;;  %v1844_v8 = vadd.f32 %v1758_v19, %v490_v5  ;;  %v652_v43 = vsel %vm582_vm1, %v1902_v55, 0.0  ;;  %v649_v59 = vsel %vm582_vm1, %v1898_v54, 0.0 }
  0xfa   : > { %799 = vadd.xlane.f32.xlu0 %v798_v3  ;;  %v1847_v9 = vadd.f32 %v1758_v19, %v554_v7  ;;  %v1926_v40 = vadd.f32 %v1758_v19, %v1809_v49  ;;  %v598_v48 = vsel %vm582_vm1, %v1914_v39, 0.0  ;;  %v595_v63 = vsel %vm582_vm1, %v1910_v57, 0.0 }
  0xfb   : > { %v643_v2 = vsel %vm582_vm1, %v1922_v61, 0.0  ;;  %v719_v41 = vmul.f32 %v1892_v51, %v1892_v51  ;;  %v735_v5 = vmul.f32 %v1902_v55, %v1902_v55  ;;  %v734_v7 = vmul.f32 %v1898_v54, %v1898_v54 }
  0xfc   : > { %v646_v1 = vsel %vm582_vm1, %v1926_v40, 0.0  ;;  %v717_v12 = vmul.f32 %v1914_v39, %v1914_v39  ;;  %v716_v13 = vmul.f32 %v1910_v57, %v1910_v57 }
  0xfd   : > { %802 = vadd.xlane.f32.xlu1 %v801_v10  ;;  %v1543_v14 = vpop.f32.mrb[12].mxu0  ;;  %v765_v49 = vsel %vm582_vm1, %v719_v41, 0.0  ;;  %v813_v10 = vsel %vm582_vm1, %v735_v5, 0.0  ;;  %v721_v41 = vmul.f32 %v1844_v8, %v1844_v8  ;;  %v737_v5 = vmul.f32 %v1847_v9, %v1847_v9 }
  0xfe   : > { %587 = vadd.xlane.f32.xlu0 %v586_v11  ;;  %v1559_v15 = vpop.f32.mrb[12].mxu1  ;;  %v1857_v16 = vadd.f32 %v1543_v14, %v1758_v19  ;;  %v503_v17 = vpop.f32.mrb[13].mxu0  ;;  %v810_v11 = vsel %vm582_vm1, %v734_v7, 0.0  ;;  %v759_v14 = vsel %vm582_vm1, %v717_v12, 0.0  ;;  %v736_v7 = vmul.f32 %v1833_v0, %v1833_v0 }
  0xff   : > { %v1860_v18 = vadd.f32 %v1559_v15, %v1758_v19  ;;  %v567_v20 = vpop.f32.mrb[13].mxu1  ;;  %v1867_v25 = vadd.f32 %v1758_v19, %v503_v17  ;;  %v1544_v26 = vpop.f32.mrb[14].mxu0  ;;  %v756_v15 = vsel %vm582_vm1, %v716_v13, 0.0  ;;  %v733_v17 = vmul.f32 %v1926_v40, %v1926_v40 }
 0x100   : > { %v1870_v27 = vadd.f32 %v1758_v19, %v567_v20  ;;  %v1560_v30 = vpop.f32.mrb[14].mxu1  ;;  %v1875_v33 = vadd.f32 %v1544_v26, %v1758_v19  ;;  %v506_v36 = vpop.f32.mrb[15].mxu0  ;;  %v732_v20 = vmul.f32 %v1922_v61, %v1922_v61  ;;  %v616_v26 = vsel %vm582_vm1, %v1838_v4, 0.0 }
 0x101   : > { %v1878_v37 = vadd.f32 %v1560_v30, %v1758_v19  ;;  %v570_v45 = vpop.f32.mrb[15].mxu1  ;;  %748 = vadd.xlane.f32.xlu1 %v747_v31  ;;  %v1881_v46 = vadd.f32 %v1758_v19, %v506_v36  ;;  %v807_v21 = vsel %vm582_vm1, %v733_v17, 0.0  ;;  %v613_v30 = vsel %vm582_vm1, %v1819_v56, 0.0 }
 0x102   : > { %745 = vadd.xlane.f32.xlu0 %v744_v32  ;;  %v1884_v47 = vadd.f32 %v1758_v19, %v570_v45  ;;  %v718_v19 = vmul.f32 %v1888_v50, %v1888_v50  ;;  %v804_v24 = vsel %vm582_vm1, %v732_v20, 0.0  ;;  %v664_v31 = vsel %vm582_vm1, %v1841_v6, 0.0 }
 0x103   : > { %v661_v32 = vsel %vm582_vm1, %v1822_v58, 0.0  ;;  %v610_v36 = vsel %vm582_vm1, %v1844_v8, 0.0  ;;  %v607_v45 = vsel %vm582_vm1, %v1830_v62, 0.0  ;;  %v628_v12 = vsel %vm582_vm1, %v1875_v33, 0.0 }
 0x104   : > { %v762_v3 = vsel %vm582_vm1, %v718_v19, 0.0  ;;  %v720_v19 = vmul.f32 %v1830_v62, %v1830_v62  ;;  %v625_v13 = vsel %vm582_vm1, %v1857_v16, 0.0  ;;  %v622_v17 = vsel %vm582_vm1, %v1881_v46, 0.0 }
 0x105   : > { %796 = vadd.xlane.f32.xlu1 %v795_v52  ;;  %v658_v52 = vsel %vm582_vm1, %v1847_v9, 0.0  ;;  %v619_v20 = vsel %vm582_vm1, %v1867_v25, 0.0 }
 0x106   : > { %793 = vadd.xlane.f32.xlu0 %v792_v53  ;;  %v655_v53 = vsel %vm582_vm1, %v1833_v0, 0.0 }
 0x109   : > { %605 = vadd.xlane.f32.xlu1 %v604_v38  ;;  %v723_v38 = vmul.f32 %v1838_v4, %v1838_v4 }
 0x10a   : > { %602 = vadd.xlane.f32.xlu0 %v601_v42  ;;  %v722_v42 = vmul.f32 %v1819_v56, %v1819_v56 }
 0x10d   : > { %653 = vadd.xlane.f32.xlu1 %v652_v43  ;;  %v777_v43 = vsel %vm582_vm1, %v723_v38, 0.0  ;;  %v741_v38 = vmul.f32 %v1884_v47, %v1884_v47 }
 0x10e   : > { %650 = vadd.xlane.f32.xlu0 %v649_v59  ;;  %v774_v59 = vsel %vm582_vm1, %v722_v42, 0.0  ;;  %v740_v42 = vmul.f32 %v1870_v27, %v1870_v27 }
 0x111   : > { %599 = vadd.xlane.f32.xlu1 %v598_v48  ;;  %v739_v48 = vmul.f32 %v1841_v6, %v1841_v6 }
 0x112   : > { %596 = vadd.xlane.f32.xlu0 %v595_v63  ;;  %v738_v63 = vmul.f32 %v1822_v58, %v1822_v58 }
 0x115   : > { %647 = vadd.xlane.f32.xlu1 %v646_v1  ;;  %v825_v1 = vsel %vm582_vm1, %v739_v48, 0.0  ;;  %v743_v48 = vmul.f32 %v1878_v37, %v1878_v37 }
 0x116   : > { %644 = vadd.xlane.f32.xlu0 %v643_v2  ;;  %v822_v2 = vsel %vm582_vm1, %v738_v63, 0.0  ;;  %v742_v63 = vmul.f32 %v1860_v18, %v1860_v18 }
 0x119   : > { %766 = vadd.xlane.f32.xlu1 %v765_v49  ;;  %v771_v49 = vsel %vm582_vm1, %v721_v41, 0.0 }
 0x11a   : > { %763 = vadd.xlane.f32.xlu0 %v762_v3  ;;  %v768_v3 = vsel %vm582_vm1, %v720_v19, 0.0 }
 0x11d   : > { %814 = vadd.xlane.f32.xlu1 %v813_v10  ;;  %v819_v10 = vsel %vm582_vm1, %v737_v5, 0.0 }
 0x11e   : > { %811 = vadd.xlane.f32.xlu0 %v810_v11  ;;  %v816_v11 = vsel %vm582_vm1, %v736_v7, 0.0 }
 0x121   : > { %760 = vadd.xlane.f32.xlu1 %v759_v14  ;;  %v676_v14 = vsel %vm582_vm1, %v1878_v37, 0.0 }
 0x122   : > { %757 = vadd.xlane.f32.xlu0 %v756_v15  ;;  %v673_v15 = vsel %vm582_vm1, %v1860_v18, 0.0 }
 0x125   : > { %808 = vadd.xlane.f32.xlu1 %v807_v21  ;;  %v670_v21 = vsel %vm582_vm1, %v1884_v47, 0.0 }
 0x126   : > { %805 = vadd.xlane.f32.xlu0 %v804_v24  ;;  %v667_v24 = vsel %vm582_vm1, %v1870_v27, 0.0 }
 0x129   : > { %617 = vadd.xlane.f32.xlu1 %v616_v26  ;;  %v727_v26 = vmul.f32 %v1875_v33, %v1875_v33 }
 0x12a   : > { %614 = vadd.xlane.f32.xlu0 %v613_v30  ;;  %v726_v30 = vmul.f32 %v1857_v16, %v1857_v16 }
 0x12d   : > { %665 = vadd.xlane.f32.xlu1 %v664_v31  ;;  %v789_v31 = vsel %vm582_vm1, %v727_v26, 0.0 }
 0x12e   : > { %662 = vadd.xlane.f32.xlu0 %v661_v32  ;;  %v786_v32 = vsel %vm582_vm1, %v726_v30, 0.0 }
 0x131   : > { %611 = vadd.xlane.f32.xlu1 %v610_v36  ;;  %v725_v36 = vmul.f32 %v1881_v46, %v1881_v46 }
 0x132   : > { %608 = vadd.xlane.f32.xlu0 %v607_v45  ;;  %v724_v45 = vmul.f32 %v1867_v25, %v1867_v25 }
 0x135   : > { %659 = vadd.xlane.f32.xlu1 %v658_v52  ;;  %v783_v52 = vsel %vm582_vm1, %v725_v36, 0.0 }
 0x136   : > { %656 = vadd.xlane.f32.xlu0 %v655_v53  ;;  %v780_v53 = vsel %vm582_vm1, %v724_v45, 0.0 }
 0x139   : > { %778 = vadd.xlane.f32.xlu1 %v777_v43  ;;  %v831_v43 = vsel %vm582_vm1, %v741_v38, 0.0 }
 0x13a   : > { %775 = vadd.xlane.f32.xlu0 %v774_v59  ;;  %v828_v59 = vsel %vm582_vm1, %v740_v42, 0.0 }
 0x13d   : > { %826 = vadd.xlane.f32.xlu1 %v825_v1  ;;  %v837_v1 = vsel %vm582_vm1, %v743_v48, 0.0 }
 0x13e   : > { %823 = vadd.xlane.f32.xlu0 %v822_v2  ;;  %v834_v2 = vsel %vm582_vm1, %v742_v63, 0.0 }
 0x141   : > { %772 = vadd.xlane.f32.xlu1 %v771_v49 }
 0x142   : > { %769 = vadd.xlane.f32.xlu0 %v768_v3 }
 0x145   : > { %820 = vadd.xlane.f32.xlu1 %v819_v10 }
 0x146   : > { %817 = vadd.xlane.f32.xlu0 %v816_v11 }
 0x149   : > { %629 = vadd.xlane.f32.xlu1 %v628_v12 }
 0x14a   : > { %626 = vadd.xlane.f32.xlu0 %v625_v13 }
 0x14d   : > { %677 = vadd.xlane.f32.xlu1 %v676_v14 }
 0x14e   : > { %674 = vadd.xlane.f32.xlu0 %v673_v15 }
 0x151   : > { %623 = vadd.xlane.f32.xlu1 %v622_v17 }
 0x152   : > { %620 = vadd.xlane.f32.xlu0 %v619_v20 }
 0x155   : > { %671 = vadd.xlane.f32.xlu1 %v670_v21 }
 0x156   : > { %668 = vadd.xlane.f32.xlu0 %v667_v24 }
 0x159   : > { %790 = vadd.xlane.f32.xlu1 %v789_v31 }
 0x15a   : > { %787 = vadd.xlane.f32.xlu0 %v786_v32 }
 0x15d   : > { %784 = vadd.xlane.f32.xlu1 %v783_v52 }
 0x15e   : > { %781 = vadd.xlane.f32.xlu0 %v780_v53 }
 0x161   : > { %832 = vadd.xlane.f32.xlu1 %v831_v43 }
 0x162   : > { %829 = vadd.xlane.f32.xlu0 %v828_v59 }
 0x165   : > { %838 = vadd.xlane.f32.xlu1 %v837_v1 }
 0x166   : > { %835 = vadd.xlane.f32.xlu0 %v834_v2 }
 0x176   : > { %v591_v19 = vpop.xlane.xlu1 %590 }
 0x177   : > { %v639_v41 = vpop.xlane.xlu0 %638  ;;  %v682_v10 = vmul.f32 0.010416667, %v591_v19 }
 0x178   : > { %v2040_v11 = vmul.f32 0.010416667, %v639_v41 }
 0x179   : > { %v874_v14 = vmul.f32 %v682_v10, %v682_v10 }
 0x17a   : > { %v594_v49 = vpop.xlane.xlu1 %593  ;;  %v890_v21 = vmul.f32 %v2040_v11, %v2040_v11 }
 0x17b   : > { %v585_v3 = vpop.xlane.xlu0 %584  ;;  %v2042_v15 = vmul.f32 0.010416667, %v594_v49 }
 0x17c   : > { %v2050_v42 = vmul.f32 0.010416667, %v585_v3 }
 0x17d   : > { %v875_v31 = vmul.f32 %v2042_v15, %v2042_v15 }
 0x17e   : > { %v642_v5 = vpop.xlane.xlu1 %641 }
 0x17f   : > { %v633_v7 = vpop.xlane.xlu0 %632  ;;  %v2046_v24 = vmul.f32 0.010416667, %v642_v5 }
 0x181   : > { %v891_v43 = vmul.f32 %v2046_v24, %v2046_v24 }
 0x182   : > { %v636_v12 = vpop.xlane.xlu1 %635 }
 0x183   : > { %v752_v13 = vpop.xlane.xlu0 %751 }
 0x184   : > { %v842_v17 = vmul.f32 0.010416667, %v752_v13  ;;  %v872_v13 = vmul.f32 %v2050_v42, %v2050_v42 }
 0x186   : > { %v906_v20 = vsub.f32 %v842_v17, %v874_v14  ;;  %v755_v26 = vpop.xlane.xlu1 %754  ;;  %v2058_v14 = vmul.f32 0.010416667, %v636_v12 }
 0x187   : > { %v800_v30 = vpop.xlane.xlu0 %799  ;;  %v843_v36 = vmul.f32 0.010416667, %v755_v26 }
 0x188   : > { %v938_v32 = vmax.f32 %v906_v20, 0.0  ;;  %v858_v45 = vmul.f32 0.010416667, %v800_v30 }
 0x189   : > { %v907_v53 = vsub.f32 %v843_v36, %v875_v31  ;;  %v2062_v31 = vmul.f32 0.010416667, %v633_v7 }
 0x18a   : > { %v1002_v52 = vadd.f32 1e-05, %v938_v32  ;;  %v922_v38 = vsub.f32 %v858_v45, %v890_v21  ;;  %v803_v59 = vpop.xlane.xlu1 %802 }
 0x18b   : > { %v588_v48 = vpop.xlane.xlu0 %587  ;;  %v939_v63 = vmax.f32 %v907_v53, 0.0  ;;  %v859_v2 = vmul.f32 0.010416667, %v803_v59 }
 0x18c   : > { %1594 = vrsqrt.f32 %v1002_v52  ;;  %v954_v1 = vmax.f32 %v922_v38, 0.0  ;;  %v2054_v41 = vmul.f32 0.010416667, %v588_v48  ;;  %v889_v52 = vmul.f32 %v2058_v14, %v2058_v14 }
 0x18d   : > { %v1003_v19 = vadd.f32 1e-05, %v939_v63  ;;  %v923_v5 = vsub.f32 %v859_v2, %v891_v43  ;;  %v970_v48 = vsub.f32 %v1761_v22, %v682_v10  ;;  %v888_v63 = vmul.f32 %v2062_v31, %v2062_v31  ;;  %v2072_v2 = vld [vmem:[%s2384_s3] ss:$0 sm:$0xff] }
 0x18e   : > { %v1018_v49 = vadd.f32 1e-05, %v954_v1  ;;  %v873_v3 = vmul.f32 %v2054_v41, %v2054_v41  ;;  %v749_v17 = vpop.xlane.xlu1 %748  ;;  %v2077_v22 = vld [vmem:[%s2385_s4] ss:$0 sm:$0xff] }
 0x18f   : > { %v746_v20 = vpop.xlane.xlu0 %745  ;;  %1596 = vrsqrt.f32 %v1003_v19  ;;  %v955_v21 = vmax.f32 %v923_v5, 0.0  ;;  %v841_v26 = vmul.f32 0.010416667, %v749_v17 }
 0x190   : > { %v840_v30 = vmul.f32 0.010416667, %v746_v20  ;;  %1598 = vrsqrt.f32 %v1018_v49 }
 0x191   : > { %v1019_v32 = vadd.f32 1e-05, %v955_v21  ;;  %v905_v36 = vsub.f32 %v841_v26, %v873_v3  ;;  %v971_v21 = vsub.f32 %v1770_v29, %v2042_v15 }
 0x192   : > { %v904_v45 = vsub.f32 %v840_v30, %v872_v13  ;;  %v797_v12 = vpop.xlane.xlu1 %796 }
 0x193   : > { %v794_v53 = vpop.xlane.xlu0 %793  ;;  %1600 = vrsqrt.f32 %v1019_v32  ;;  %v937_v38 = vmax.f32 %v905_v36, 0.0  ;;  %v857_v59 = vmul.f32 0.010416667, %v797_v12  ;;  %v986_v36 = vsub.f32 %v1764_v23, %v2040_v11 }
 0x194   : > { %v936_v43 = vmax.f32 %v904_v45, 0.0  ;;  %v856_v7 = vmul.f32 0.010416667, %v794_v53  ;;  %v987_v23 = vsub.f32 %v1780_v35, %v2046_v24  ;;  %v969_v24 = vsub.f32 %v1825_v60, %v2054_v41 }
 0x195   : > { %v1001_v19 = vadd.f32 1e-05, %v937_v38  ;;  %v921_v5 = vsub.f32 %v857_v59, %v889_v52 }
 0x196   : > { %v1595_v1 = vpop.eup %1594  ;;  %v1000_v49 = vadd.f32 1e-05, %v936_v43  ;;  %v920_v3 = vsub.f32 %v856_v7, %v888_v63  ;;  %v606_v17 = vpop.xlane.xlu1 %605 }
 0x197   : > { %v1066_v13 = vmul.f32 %v1595_v1, %v970_v48  ;;  %v603_v20 = vpop.xlane.xlu0 %602  ;;  %1602 = vrsqrt.f32 %v1001_v19  ;;  %v953_v10 = vmax.f32 %v921_v5, 0.0 }
 0x198   : > { %1604 = vrsqrt.f32 %v1000_v49  ;;  %v952_v30 = vmax.f32 %v920_v3, 0.0 }
 0x199   : > { %v1105_v26 = vmul.f32 %v2072_v2, %v1066_v13  ;;  %v1597_v32 = vpop.eup %1596  ;;  %v1017_v45 = vadd.f32 1e-05, %v953_v10  ;;  %v968_v10 = vsub.f32 %v1767_v28, %v2050_v42  ;;  %v985_v28 = vsub.f32 %v1799_v44, %v2058_v14 }
 0x19a   : > { %v1599_v52 = vpop.eup %1598  ;;  %v1067_v53 = vmul.f32 %v1597_v32, %v971_v21  ;;  %v1016_v38 = vadd.f32 1e-05, %v952_v30  ;;  %v654_v43 = vpop.xlane.xlu1 %653 }
 0x19b   : > { %v1144_v12 = vadd.f32 %v2077_v22, %v1105_v26  ;;  %v651_v59 = vpop.xlane.xlu0 %650  ;;  %v1082_v29 = vmul.f32 %v1599_v52, %v986_v36  ;;  %1606 = vrsqrt.f32 %v1017_v45  ;;  %v2105_v26 = vmul.f32 0.010416667, %v606_v17 }
 0x19c   : > { %v1106_v15 = vmul.f32 %v2072_v2, %v1067_v53  ;;  %1608 = vrsqrt.f32 %v1016_v38  ;;  %v2110_v45 = vmul.f32 0.010416667, %v603_v20  ;;  %v984_v53 = vsub.f32 %v1777_v34, %v2062_v31 }
 0x19d   : > { %v1474_v11 = vpack.c.bf16 %v1144_v12, %v1144_v12  ;;  %v1601_v48 = vpop.eup %1600  ;;  %v1121_v63 = vmul.f32 %v2072_v2, %v1082_v29  ;;  %v879_v20 = vmul.f32 %v2105_v26, %v2105_v26  ;;  %v2127_v14 = vmul.f32 0.010416667, %v654_v43 }
 0x19e   : > { %v1145_v7 = vadd.f32 %v2077_v22, %v1106_v15  ;;  %v1083_v1 = vmul.f32 %v1601_v48, %v987_v23  ;;  %v600_v19 = vpop.xlane.xlu1 %599  ;;  %v878_v44 = vmul.f32 %v2110_v45, %v2110_v45 }
 0x19f   : > { %1305 = vst.msk [vmem:[%s2090_s14 + $0x8] sm:$0xf] %vm1302_vm2, %v1474_v11  ;;  %v597_v49 = vpop.xlane.xlu0 %596  ;;  %v1160_v5 = vadd.f32 %v2077_v22, %v1121_v63 }
 0x1a0   : > { %v1475_v13 = vpack.c.bf16 %v1145_v7, %v1145_v7  ;;  %v1122_v35 = vmul.f32 %v2072_v2, %v1083_v1 }
 0x1a1   : > { %v1603_v3 = vpop.eup %1602  ;;  %v1490_v21 = vpack.c.bf16 %v1160_v5, %v1160_v5 }
 0x1a2   : > { %v1605_v30 = vpop.eup %1604  ;;  %1306 = vst.msk [vmem:[%s2090_s14 + $0xc] sm:$0xf] %vm1302_vm2, %v1475_v13  ;;  %v1161_v32 = vadd.f32 %v2077_v22, %v1122_v35  ;;  %v1065_v36 = vmul.f32 %v1603_v3, %v969_v24  ;;  %v648_v52 = vpop.xlane.xlu1 %647  ;;  %v2131_v13 = vmul.f32 0.010416667, %v651_v59 }
 0x1a3   : > { %v645_v12 = vpop.xlane.xlu0 %644  ;;  %1321 = vst.msk [vmem:[%s2090_s14 + $0x48] sm:$0xf] %vm1302_vm2, %v1490_v21  ;;  %v1064_v60 = vmul.f32 %v1605_v30, %v968_v10  ;;  %v895_v21 = vmul.f32 %v2127_v14, %v2127_v14  ;;  %v2139_v30 = vmul.f32 0.010416667, %v600_v19 }
 0x1a4   : > { %v1491_v42 = vpack.c.bf16 %v1161_v32, %v1161_v32  ;;  %v1104_v41 = vmul.f32 %v2072_v2, %v1065_v36  ;;  %v2141_v32 = vmul.f32 0.010416667, %v597_v49 }
 0x1a5   : > { %v1607_v17 = vpop.eup %1606  ;;  %v1103_v38 = vmul.f32 %v2072_v2, %v1064_v60 }
 0x1a6   : > { %v1609_v29 = vpop.eup %1608  ;;  %1322 = vst.msk [vmem:[%s2090_s14 + $0x4c] sm:$0xf] %vm1302_vm2, %v1491_v42  ;;  %v1143_v23 = vadd.f32 %v2077_v22, %v1104_v41  ;;  %v1081_v11 = vmul.f32 %v1607_v17, %v985_v28  ;;  %v767_v15 = vpop.xlane.xlu1 %766 }
 0x1a7   : > { %v764_v48 = vpop.xlane.xlu0 %763  ;;  %v1142_v34 = vadd.f32 %v2077_v22, %v1103_v38  ;;  %v1080_v31 = vmul.f32 %v1609_v29, %v984_v53  ;;  %v847_v63 = vmul.f32 0.010416667, %v767_v15  ;;  %v894_v53 = vmul.f32 %v2131_v13, %v2131_v13 }
 0x1a8   : > { %v846_v7 = vmul.f32 0.010416667, %v764_v48  ;;  %v1473_v1 = vpack.c.bf16 %v1143_v23, %v1143_v23  ;;  %v1120_v5 = vmul.f32 %v2072_v2, %v1081_v11  ;;  %v877_v23 = vmul.f32 %v2139_v30, %v2139_v30 }
 0x1a9   : > { %v1472_v35 = vpack.c.bf16 %v1142_v34, %v1142_v34  ;;  %v1119_v24 = vmul.f32 %v2072_v2, %v1080_v31  ;;  %v911_v3 = vsub.f32 %v847_v63, %v879_v20  ;;  %v876_v11 = vmul.f32 %v2141_v32, %v2141_v32 }
 0x1aa   : > { %v910_v10 = vsub.f32 %v846_v7, %v878_v44  ;;  %1304 = vst.msk [vmem:[%s2090_s14 + $0x4] sm:$0xf] %vm1302_vm2, %v1473_v1  ;;  %v1159_v43 = vadd.f32 %v2077_v22, %v1120_v5  ;;  %v815_v36 = vpop.xlane.xlu1 %814  ;;  %v2154_v44 = vmul.f32 0.010416667, %v648_v52  ;;  %v2158_v1 = vmul.f32 0.010416667, %v645_v12 }
 0x1ab   : > { %v812_v59 = vpop.xlane.xlu0 %811  ;;  %1303 = vst.msk [vmem:[%s2090_s14] sm:$0xf] %vm1302_vm2, %v1472_v35  ;;  %v1158_v60 = vadd.f32 %v2077_v22, %v1119_v24  ;;  %v943_v28 = vmax.f32 %v911_v3, 0.0  ;;  %v863_v41 = vmul.f32 0.010416667, %v815_v36 }
 0x1ac   : > { %v942_v42 = vmax.f32 %v910_v10, 0.0  ;;  %v1489_v17 = vpack.c.bf16 %v1159_v43, %v1159_v43  ;;  %v862_v38 = vmul.f32 0.010416667, %v812_v59  ;;  %v893_v52 = vmul.f32 %v2154_v44, %v2154_v44 }
 0x1ad   : > { %v1488_v19 = vpack.c.bf16 %v1158_v60, %v1158_v60  ;;  %v1007_v20 = vadd.f32 1e-05, %v943_v28  ;;  %v927_v49 = vsub.f32 %v863_v41, %v895_v21  ;;  %v892_v28 = vmul.f32 %v2158_v1, %v2158_v1 }
 0x1ae   : > { %v1006_v29 = vadd.f32 1e-05, %v942_v42  ;;  %1320 = vst.msk [vmem:[%s2090_s14 + $0x44] sm:$0xf] %vm1302_vm2, %v1489_v17  ;;  %v926_v15 = vsub.f32 %v862_v38, %v894_v53  ;;  %v761_v48 = vpop.xlane.xlu1 %760 }
 0x1af   : > { %v758_v34 = vpop.xlane.xlu0 %757  ;;  %1319 = vst.msk [vmem:[%s2090_s14 + $0x40] sm:$0xf] %vm1302_vm2, %v1488_v19  ;;  %1610 = vrsqrt.f32 %v1007_v20  ;;  %v959_v31 = vmax.f32 %v927_v49, 0.0  ;;  %v845_v63 = vmul.f32 0.010416667, %v761_v48 }
 0x1b0   : > { %v844_v7 = vmul.f32 0.010416667, %v758_v34  ;;  %1612 = vrsqrt.f32 %v1006_v29  ;;  %v958_v5 = vmax.f32 %v926_v15, 0.0  ;;  %v975_v29 = vsub.f32 %v1892_v51, %v2105_v26 }
 0x1b1   : > { %v1023_v35 = vadd.f32 1e-05, %v959_v31  ;;  %v909_v24 = vsub.f32 %v845_v63, %v877_v23  ;;  %v990_v26 = vsub.f32 %v1898_v54, %v2131_v13  ;;  %v972_v13 = vsub.f32 %v1910_v57, %v2141_v32 }
 0x1b2   : > { %v908_v3 = vsub.f32 %v844_v7, %v876_v11  ;;  %v1022_v10 = vadd.f32 1e-05, %v958_v5  ;;  %v809_v43 = vpop.xlane.xlu1 %808  ;;  %v974_v11 = vsub.f32 %v1888_v50, %v2110_v45 }
 0x1b3   : > { %v806_v21 = vpop.xlane.xlu0 %805  ;;  %1614 = vrsqrt.f32 %v1023_v35  ;;  %v941_v36 = vmax.f32 %v909_v24, 0.0  ;;  %v861_v60 = vmul.f32 0.010416667, %v809_v43  ;;  %v991_v35 = vsub.f32 %v1902_v55, %v2127_v14 }
 0x1b4   : > { %v940_v59 = vmax.f32 %v908_v3, 0.0  ;;  %1616 = vrsqrt.f32 %v1022_v10  ;;  %v860_v12 = vmul.f32 0.010416667, %v806_v21  ;;  %v973_v55 = vsub.f32 %v1914_v39, %v2139_v30 }
 0x1b5   : > { %v1005_v42 = vadd.f32 1e-05, %v941_v36  ;;  %v925_v17 = vsub.f32 %v861_v60, %v893_v52 }
 0x1b6   : > { %v1004_v41 = vadd.f32 1e-05, %v940_v59  ;;  %v924_v53 = vsub.f32 %v860_v12, %v892_v28  ;;  %v618_v38 = vpop.xlane.xlu1 %617 }
 0x1b7   : > { %v615_v19 = vpop.xlane.xlu0 %614  ;;  %1618 = vrsqrt.f32 %v1005_v42  ;;  %v957_v20 = vmax.f32 %v925_v17, 0.0  ;;  %v2182_v12 = vmul.f32 0.010416667, %v618_v38  ;;  %v989_v38 = vsub.f32 %v1926_v40, %v2154_v44 }
 0x1b8   : > { %1620 = vrsqrt.f32 %v1004_v41  ;;  %v956_v49 = vmax.f32 %v924_v53, 0.0  ;;  %v2187_v39 = vmul.f32 0.010416667, %v615_v19 }
 0x1b9   : > { %v1611_v23 = vpop.eup %1610  ;;  %v1021_v15 = vadd.f32 1e-05, %v957_v20 }
 0x1ba   : > { %v1613_v48 = vpop.eup %1612  ;;  %v1071_v34 = vmul.f32 %v1611_v23, %v975_v29  ;;  %v1020_v31 = vadd.f32 1e-05, %v956_v49  ;;  %v666_v63 = vpop.xlane.xlu1 %665  ;;  %v988_v23 = vsub.f32 %v1922_v61, %v2158_v1  ;;  %v882_v44 = vmul.f32 %v2187_v39, %v2187_v39 }
 0x1bb   : > { %v663_v7 = vpop.xlane.xlu0 %662  ;;  %v1070_v5 = vmul.f32 %v1613_v48, %v974_v11  ;;  %1622 = vrsqrt.f32 %v1021_v15  ;;  %v883_v15 = vmul.f32 %v2182_v12, %v2182_v12 }
 0x1bc   : > { %v1110_v24 = vmul.f32 %v2072_v2, %v1071_v34  ;;  %1624 = vrsqrt.f32 %v1020_v31  ;;  %v2205_v31 = vmul.f32 0.010416667, %v666_v63 }
 0x1bd   : > { %v1615_v51 = vpop.eup %1614  ;;  %v1109_v50 = vmul.f32 %v2072_v2, %v1070_v5 }
 0x1be   : > { %v1617_v45 = vpop.eup %1616  ;;  %v1149_v3 = vadd.f32 %v2077_v22, %v1110_v24  ;;  %v1087_v52 = vmul.f32 %v1615_v51, %v991_v35  ;;  %v612_v10 = vpop.xlane.xlu1 %611 }
 0x1bf   : > { %v609_v43 = vpop.xlane.xlu0 %608  ;;  %v1148_v21 = vadd.f32 %v2077_v22, %v1109_v50  ;;  %v1086_v36 = vmul.f32 %v1617_v45, %v990_v26  ;;  %v2211_v45 = vmul.f32 0.010416667, %v663_v7 }
 0x1c0   : > { %v1479_v14 = vpack.c.bf16 %v1149_v3, %v1149_v3  ;;  %v1126_v59 = vmul.f32 %v2072_v2, %v1087_v52 }
 0x1c1   : > { %v1619_v54 = vpop.eup %1618  ;;  %v1478_v60 = vpack.c.bf16 %v1148_v21, %v1148_v21  ;;  %v1125_v28 = vmul.f32 %v2072_v2, %v1086_v36 }
 0x1c2   : > { %v1621_v42 = vpop.eup %1620  ;;  %1310 = vst.msk [vmem:[%s2090_s14 + $0x1c] sm:$0xf] %vm1302_vm2, %v1479_v14  ;;  %v1165_v41 = vadd.f32 %v2077_v22, %v1126_v59  ;;  %v1069_v17 = vmul.f32 %v1619_v54, %v973_v55  ;;  %v660_v30 = vpop.xlane.xlu1 %659  ;;  %v899_v55 = vmul.f32 %v2205_v31, %v2205_v31  ;;  %v2219_v14 = vmul.f32 0.010416667, %v612_v10 }
 0x1c3   : > { %v657_v53 = vpop.xlane.xlu0 %656  ;;  %1309 = vst.msk [vmem:[%s2090_s14 + $0x18] sm:$0xf] %vm1302_vm2, %v1478_v60  ;;  %v1164_v57 = vadd.f32 %v2077_v22, %v1125_v28  ;;  %v1068_v32 = vmul.f32 %v1621_v42, %v972_v13  ;;  %v2221_v59 = vmul.f32 0.010416667, %v609_v43 }
 0x1c4   : > { %v1495_v20 = vpack.c.bf16 %v1165_v41, %v1165_v41  ;;  %v1108_v29 = vmul.f32 %v2072_v2, %v1069_v17  ;;  %v898_v17 = vmul.f32 %v2211_v45, %v2211_v45 }
 0x1c5   : > { %v1623_v49 = vpop.eup %1622  ;;  %v1494_v19 = vpack.c.bf16 %v1164_v57, %v1164_v57  ;;  %v1107_v11 = vmul.f32 %v2072_v2, %v1068_v32 }
 0x1c6   : > { %v1625_v48 = vpop.eup %1624  ;;  %1326 = vst.msk [vmem:[%s2090_s14 + $0x5c] sm:$0xf] %vm1302_vm2, %v1495_v20  ;;  %v1147_v34 = vadd.f32 %v2077_v22, %v1108_v29  ;;  %v1085_v40 = vmul.f32 %v1623_v49, %v989_v38  ;;  %v779_v5 = vpop.xlane.xlu1 %778  ;;  %v881_v20 = vmul.f32 %v2219_v14, %v2219_v14  ;;  %v880_v29 = vmul.f32 %v2221_v59, %v2221_v59 }
 0x1c7   : > { %v776_v61 = vpop.xlane.xlu0 %775  ;;  %1325 = vst.msk [vmem:[%s2090_s14 + $0x58] sm:$0xf] %vm1302_vm2, %v1494_v19  ;;  %v1146_v1 = vadd.f32 %v2077_v22, %v1107_v11  ;;  %v1084_v35 = vmul.f32 %v1625_v48, %v988_v23  ;;  %v851_v24 = vmul.f32 0.010416667, %v779_v5  ;;  %v2234_v49 = vmul.f32 0.010416667, %v660_v30 }
 0x1c8   : > { %v850_v51 = vmul.f32 0.010416667, %v776_v61  ;;  %v1477_v26 = vpack.c.bf16 %v1147_v34, %v1147_v34  ;;  %v1124_v50 = vmul.f32 %v2072_v2, %v1085_v40  ;;  %v2238_v40 = vmul.f32 0.010416667, %v657_v53 }
 0x1c9   : > { %v1476_v3 = vpack.c.bf16 %v1146_v1, %v1146_v1  ;;  %v1123_v52 = vmul.f32 %v2072_v2, %v1084_v35  ;;  %v915_v63 = vsub.f32 %v851_v24, %v883_v15  ;;  %v897_v30 = vmul.f32 %v2234_v49, %v2234_v49 }
 0x1ca   : > { %v914_v21 = vsub.f32 %v850_v51, %v882_v44  ;;  %1308 = vst.msk [vmem:[%s2090_s14 + $0x14] sm:$0xf] %vm1302_vm2, %v1477_v26  ;;  %v1163_v36 = vadd.f32 %v2077_v22, %v1124_v50  ;;  %v827_v54 = vpop.xlane.xlu1 %826 }
 0x1cb   : > { %v824_v7 = vpop.xlane.xlu0 %823  ;;  %1307 = vst.msk [vmem:[%s2090_s14 + $0x10] sm:$0xf] %vm1302_vm2, %v1476_v3  ;;  %v1162_v13 = vadd.f32 %v2077_v22, %v1123_v52  ;;  %v947_v60 = vmax.f32 %v915_v63, 0.0  ;;  %v867_v42 = vmul.f32 0.010416667, %v827_v54  ;;  %v896_v52 = vmul.f32 %v2238_v40, %v2238_v40 }
 0x1cc   : > { %v946_v28 = vmax.f32 %v914_v21, 0.0  ;;  %v1493_v41 = vpack.c.bf16 %v1163_v36, %v1163_v36  ;;  %v866_v57 = vmul.f32 0.010416667, %v824_v7 }
 0x1cd   : > { %v1492_v10 = vpack.c.bf16 %v1162_v13, %v1162_v13  ;;  %v1011_v32 = vadd.f32 1e-05, %v947_v60  ;;  %v931_v43 = vsub.f32 %v867_v42, %v899_v55  ;;  %v979_v60 = vsub.f32 %v1838_v4, %v2182_v12 }
 0x1ce   : > { %v1010_v38 = vadd.f32 1e-05, %v946_v28  ;;  %1324 = vst.msk [vmem:[%s2090_s14 + $0x54] sm:$0xf] %vm1302_vm2, %v1493_v41  ;;  %v930_v23 = vsub.f32 %v866_v57, %v898_v17  ;;  %v773_v19 = vpop.xlane.xlu1 %772  ;;  %v978_v41 = vsub.f32 %v1819_v56, %v2187_v39  ;;  %v994_v56 = vsub.f32 %v1822_v58, %v2211_v45 }
 0x1cf   : > { %v770_v11 = vpop.xlane.xlu0 %769  ;;  %1323 = vst.msk [vmem:[%s2090_s14 + $0x50] sm:$0xf] %vm1302_vm2, %v1492_v10  ;;  %1626 = vrsqrt.f32 %v1011_v32  ;;  %v963_v15 = vmax.f32 %v931_v43, 0.0  ;;  %v849_v48 = vmul.f32 0.010416667, %v773_v19  ;;  %v976_v45 = vsub.f32 %v1830_v62, %v2221_v59 }
 0x1d0   : > { %v848_v34 = vmul.f32 0.010416667, %v770_v11  ;;  %1628 = vrsqrt.f32 %v1010_v38  ;;  %v962_v44 = vmax.f32 %v930_v23, 0.0 }
 0x1d1   : > { %v1027_v5 = vadd.f32 1e-05, %v963_v15  ;;  %v913_v61 = vsub.f32 %v849_v48, %v881_v20 }
 0x1d2   : > { %v912_v1 = vsub.f32 %v848_v34, %v880_v29  ;;  %v1026_v35 = vadd.f32 1e-05, %v962_v44  ;;  %v821_v24 = vpop.xlane.xlu1 %820  ;;  %v995_v29 = vsub.f32 %v1841_v6, %v2205_v31  ;;  %v977_v6 = vsub.f32 %v1844_v8, %v2219_v14 }
 0x1d3   : > { %v818_v51 = vpop.xlane.xlu0 %817  ;;  %1630 = vrsqrt.f32 %v1027_v5  ;;  %v945_v26 = vmax.f32 %v913_v61, 0.0  ;;  %v865_v3 = vmul.f32 0.010416667, %v821_v24 }
 0x1d4   : > { %v944_v50 = vmax.f32 %v912_v1, 0.0  ;;  %1632 = vrsqrt.f32 %v1026_v35  ;;  %v864_v53 = vmul.f32 0.010416667, %v818_v51 }
 0x1d5   : > { %v1009_v63 = vadd.f32 1e-05, %v945_v26  ;;  %v929_v36 = vsub.f32 %v865_v3, %v897_v30 }
 0x1d6   : > { %v1008_v21 = vadd.f32 1e-05, %v944_v50  ;;  %v928_v55 = vsub.f32 %v864_v53, %v896_v52  ;;  %v630_v54 = vpop.xlane.xlu1 %629  ;;  %v993_v50 = vsub.f32 %v1847_v9, %v2234_v49 }
 0x1d7   : > { %v627_v7 = vpop.xlane.xlu0 %626  ;;  %1634 = vrsqrt.f32 %v1009_v63  ;;  %v961_v13 = vmax.f32 %v929_v36, 0.0  ;;  %v2266_v30 = vmul.f32 0.010416667, %v630_v54  ;;  %v992_v63 = vsub.f32 %v1833_v0, %v2238_v40 }
 0x1d8   : > { %1636 = vrsqrt.f32 %v1008_v21  ;;  %v960_v28 = vmax.f32 %v928_v55, 0.0  ;;  %v2271_v8 = vmul.f32 0.010416667, %v627_v7 }
 0x1d9   : > { %v1627_v42 = vpop.eup %1626  ;;  %v1025_v17 = vadd.f32 1e-05, %v961_v13  ;;  %v887_v55 = vmul.f32 %v2266_v30, %v2266_v30 }
 0x1da   : > { %v1629_v57 = vpop.eup %1628  ;;  %v1075_v10 = vmul.f32 %v1627_v42, %v979_v60  ;;  %v1024_v32 = vadd.f32 1e-05, %v960_v28  ;;  %v2248_v38 = vpop.xlane.xlu1 %677  ;;  %v886_v49 = vmul.f32 %v2271_v8, %v2271_v8 }
 0x1db   : > { %v2250_v43 = vpop.xlane.xlu0 %674  ;;  %v1074_v20 = vmul.f32 %v1629_v57, %v978_v41  ;;  %1638 = vrsqrt.f32 %v1025_v17 }
 0x1dc   : > { %v1114_v4 = vmul.f32 %v2072_v2, %v1075_v10  ;;  %1640 = vrsqrt.f32 %v1024_v32 }
 0x1dd   : > { %v1631_v12 = vpop.eup %1630  ;;  %v1113_v39 = vmul.f32 %v2072_v2, %v1074_v20 }
 0x1de   : > { %v1633_v23 = vpop.eup %1632  ;;  %v1153_v19 = vadd.f32 %v2077_v22, %v1114_v4  ;;  %v1091_v11 = vmul.f32 %v1631_v12, %v995_v29  ;;  %v624_v15 = vpop.xlane.xlu1 %623 }
 0x1df   : > { %v621_v48 = vpop.xlane.xlu0 %620  ;;  %v1152_v34 = vadd.f32 %v2077_v22, %v1113_v39  ;;  %v1090_v44 = vmul.f32 %v1633_v23, %v994_v56  ;;  %v2289_v13 = vmul.f32 0.010416667, %v624_v15 }
 0x1e0   : > { %v1483_v31 = vpack.c.bf16 %v1153_v19, %v1153_v19  ;;  %v1130_v5 = vmul.f32 %v2072_v2, %v1091_v11  ;;  %v2295_v10 = vmul.f32 0.010416667, %v621_v48 }
 0x1e1   : > { %v1635_v58 = vpop.eup %1634  ;;  %v1482_v61 = vpack.c.bf16 %v1152_v34, %v1152_v34  ;;  %v1129_v1 = vmul.f32 %v2072_v2, %v1090_v44  ;;  %v885_v56 = vmul.f32 %v2289_v13, %v2289_v13 }
 0x1e2   : > { %v1637_v35 = vpop.eup %1636  ;;  %1314 = vst.msk [vmem:[%s2090_s14 + $0x2c] sm:$0xf] %vm1302_vm2, %v1483_v31  ;;  %v1169_v24 = vadd.f32 %v2077_v22, %v1130_v5  ;;  %v1073_v51 = vmul.f32 %v1635_v58, %v977_v6  ;;  %v672_v14 = vpop.xlane.xlu1 %671  ;;  %v884_v31 = vmul.f32 %v2295_v10, %v2295_v10 }
 0x1e3   : > { %v669_v26 = vpop.xlane.xlu0 %668  ;;  %1313 = vst.msk [vmem:[%s2090_s14 + $0x28] sm:$0xf] %vm1302_vm2, %v1482_v61  ;;  %v1168_v62 = vadd.f32 %v2077_v22, %v1129_v1  ;;  %v1072_v59 = vmul.f32 %v1637_v35, %v976_v45  ;;  %v2303_v39 = vmul.f32 0.010416667, %v672_v14  ;;  %v2315_v35 = vmul.f32 0.010416667, %v2248_v38 }
 0x1e4   : > { %v1499_v3 = vpack.c.bf16 %v1169_v24, %v1169_v24  ;;  %v1112_v52 = vmul.f32 %v2072_v2, %v1073_v51  ;;  %v2305_v23 = vmul.f32 0.010416667, %v669_v26 }
 0x1e5   : > { %v1639_v53 = vpop.eup %1638  ;;  %v1498_v21 = vpack.c.bf16 %v1168_v62, %v1168_v62  ;;  %v1111_v36 = vmul.f32 %v2072_v2, %v1072_v59  ;;  %v901_v24 = vmul.f32 %v2303_v39, %v2303_v39 }
 0x1e6   : > { %v1641_v54 = vpop.eup %1640  ;;  %1330 = vst.msk [vmem:[%s2090_s14 + $0x6c] sm:$0xf] %vm1302_vm2, %v1499_v3  ;;  %v1151_v7 = vadd.f32 %v2077_v22, %v1112_v52  ;;  %v1089_v9 = vmul.f32 %v1639_v53, %v993_v50  ;;  %v791_v60 = vpop.xlane.xlu1 %790  ;;  %v900_v51 = vmul.f32 %v2305_v23, %v2305_v23  ;;  %v2324_v52 = vmul.f32 0.010416667, %v2250_v43 }
 0x1e7   : > { %v788_v0 = vpop.xlane.xlu0 %787  ;;  %1329 = vst.msk [vmem:[%s2090_s14 + $0x68] sm:$0xf] %vm1302_vm2, %v1498_v21  ;;  %v1150_v40 = vadd.f32 %v2077_v22, %v1111_v36  ;;  %v1088_v28 = vmul.f32 %v1641_v54, %v992_v63  ;;  %v855_v42 = vmul.f32 0.010416667, %v791_v60  ;;  %v903_v36 = vmul.f32 %v2315_v35, %v2315_v35 }
 0x1e8   : > { %v854_v41 = vmul.f32 0.010416667, %v788_v0  ;;  %v1481_v17 = vpack.c.bf16 %v1151_v7, %v1151_v7  ;;  %v1128_v57 = vmul.f32 %v2072_v2, %v1089_v9  ;;  %v902_v0 = vmul.f32 %v2324_v52, %v2324_v52 }
 0x1e9   : > { %v1480_v32 = vpack.c.bf16 %v1150_v40, %v1150_v40  ;;  %v1127_v20 = vmul.f32 %v2072_v2, %v1088_v28  ;;  %v919_v29 = vsub.f32 %v855_v42, %v887_v55 }
 0x1ea   : > { %v918_v4 = vsub.f32 %v854_v41, %v886_v49  ;;  %1312 = vst.msk [vmem:[%s2090_s14 + $0x24] sm:$0xf] %vm1302_vm2, %v1481_v17  ;;  %v1167_v12 = vadd.f32 %v2077_v22, %v1128_v57  ;;  %v785_v19 = vpop.xlane.xlu1 %784  ;;  %v983_v57 = vsub.f32 %v1875_v33, %v2266_v30  ;;  %v980_v33 = vsub.f32 %v1867_v25, %v2295_v10 }
 0x1eb   : > { %v782_v11 = vpop.xlane.xlu0 %781  ;;  %1311 = vst.msk [vmem:[%s2090_s14 + $0x20] sm:$0xf] %vm1302_vm2, %v1480_v32  ;;  %v1166_v15 = vadd.f32 %v2077_v22, %v1127_v20  ;;  %v951_v48 = vmax.f32 %v919_v29, 0.0  ;;  %v853_v44 = vmul.f32 0.010416667, %v785_v19  ;;  %v982_v29 = vsub.f32 %v1857_v16, %v2271_v8 }
 0x1ec   : > { %v950_v34 = vmax.f32 %v918_v4, 0.0  ;;  %v1497_v6 = vpack.c.bf16 %v1167_v12, %v1167_v12  ;;  %v852_v5 = vmul.f32 0.010416667, %v782_v11  ;;  %v996_v25 = vsub.f32 %v1870_v27, %v2305_v23 }
 0x1ed   : > { %v1496_v58 = vpack.c.bf16 %v1166_v15, %v1166_v15  ;;  %v1015_v45 = vadd.f32 1e-05, %v951_v48  ;;  %v917_v1 = vsub.f32 %v853_v44, %v885_v56  ;;  %v981_v15 = vsub.f32 %v1881_v46, %v2289_v13 }
 0x1ee   : > { %v1014_v61 = vadd.f32 1e-05, %v950_v34  ;;  %1328 = vst.msk [vmem:[%s2090_s14 + $0x64] sm:$0xf] %vm1302_vm2, %v1497_v6  ;;  %v916_v14 = vsub.f32 %v852_v5, %v884_v31  ;;  %v833_v26 = vpop.xlane.xlu1 %832  ;;  %v997_v46 = vsub.f32 %v1884_v47, %v2303_v39 }
 0x1ef   : > { %v830_v62 = vpop.xlane.xlu0 %829  ;;  %1327 = vst.msk [vmem:[%s2090_s14 + $0x60] sm:$0xf] %vm1302_vm2, %v1496_v58  ;;  %1642 = vrsqrt.f32 %v1015_v45  ;;  %v949_v59 = vmax.f32 %v917_v1, 0.0  ;;  %v869_v50 = vmul.f32 0.010416667, %v833_v26  ;;  %v998_v26 = vsub.f32 %v1860_v18, %v2324_v52 }
 0x1f0   : > { %v868_v3 = vmul.f32 0.010416667, %v830_v62  ;;  %1644 = vrsqrt.f32 %v1014_v61  ;;  %v948_v38 = vmax.f32 %v916_v14, 0.0 }
 0x1f1   : > { %v1013_v53 = vadd.f32 1e-05, %v949_v59  ;;  %v933_v63 = vsub.f32 %v869_v50, %v901_v24 }
 0x1f2   : > { %v932_v21 = vsub.f32 %v868_v3, %v900_v51  ;;  %v1012_v55 = vadd.f32 1e-05, %v948_v38  ;;  %v839_v54 = vpop.xlane.xlu1 %838  ;;  %v999_v51 = vsub.f32 %v1878_v37, %v2315_v35 }
 0x1f3   : > { %v836_v7 = vpop.xlane.xlu0 %835  ;;  %1646 = vrsqrt.f32 %v1013_v53  ;;  %v965_v9 = vmax.f32 %v933_v63, 0.0  ;;  %v871_v60 = vmul.f32 0.010416667, %v839_v54 }
 0x1f4   : > { %v964_v49 = vmax.f32 %v932_v21, 0.0  ;;  %1648 = vrsqrt.f32 %v1012_v55  ;;  %v870_v43 = vmul.f32 0.010416667, %v836_v7 }
 0x1f5   : > { %v1029_v40 = vadd.f32 1e-05, %v965_v9  ;;  %v935_v42 = vsub.f32 %v871_v60, %v903_v36 }
 0x1f6   : > { %v1028_v28 = vadd.f32 1e-05, %v964_v49  ;;  %v934_v41 = vsub.f32 %v870_v43, %v902_v0 }
 0x1f7   : > { %1650 = vrsqrt.f32 %v1029_v40  ;;  %v967_v17 = vmax.f32 %v935_v42, 0.0 }
 0x1f8   : > { %1652 = vrsqrt.f32 %v1028_v28  ;;  %v966_v32 = vmax.f32 %v934_v41, 0.0 }
 0x1f9   : > { %v1643_v20 = vpop.eup %1642  ;;  %v1031_v4 = vadd.f32 1e-05, %v967_v17 }
 0x1fa   : > { %v1645_v12 = vpop.eup %1644  ;;  %v1079_v56 = vmul.f32 %v1643_v20, %v983_v57  ;;  %v1030_v19 = vadd.f32 1e-05, %v966_v32 }
 0x1fb   : > { %v1078_v11 = vmul.f32 %v1645_v12, %v982_v29  ;;  %1654 = vrsqrt.f32 %v1031_v4 }
 0x1fc   : > { %v1118_v48 = vmul.f32 %v2072_v2, %v1079_v56  ;;  %1656 = vrsqrt.f32 %v1030_v19 }
 0x1fd   : > { %v1647_v34 = vpop.eup %1646  ;;  %v1117_v30 = vmul.f32 %v2072_v2, %v1078_v11 }
 0x1fe   : > { %v1649_v16 = vpop.eup %1648  ;;  %v1157_v8 = vadd.f32 %v2077_v22, %v1118_v48  ;;  %v1077_v44 = vmul.f32 %v1647_v34, %v981_v15 }
 0x1ff   : > { %v1156_v6 = vadd.f32 %v2077_v22, %v1117_v30  ;;  %v1076_v31 = vmul.f32 %v1649_v16, %v980_v33 }
 0x200   : > { %v1487_v13 = vpack.c.bf16 %v1157_v8, %v1157_v8  ;;  %v1116_v5 = vmul.f32 %v2072_v2, %v1077_v44 }
 0x201   : > { %v1651_v58 = vpop.eup %1650  ;;  %v1486_v10 = vpack.c.bf16 %v1156_v6, %v1156_v6  ;;  %v1115_v45 = vmul.f32 %v2072_v2, %v1076_v31 }
 0x202   : > { %v1653_v61 = vpop.eup %1652  ;;  %1318 = vst.msk [vmem:[%s2090_s14 + $0x3c] sm:$0xf] %vm1302_vm2, %v1487_v13  ;;  %v1155_v1 = vadd.f32 %v2077_v22, %v1116_v5  ;;  %v1093_v24 = vmul.f32 %v1651_v58, %v997_v46 }
 0x203   : > { %1317 = vst.msk [vmem:[%s2090_s14 + $0x38] sm:$0xf] %vm1302_vm2, %v1486_v10  ;;  %v1154_v47 = vadd.f32 %v2077_v22, %v1115_v45  ;;  %v1092_v39 = vmul.f32 %v1653_v61, %v996_v25 }
 0x204   : > { %v1485_v27 = vpack.c.bf16 %v1155_v1, %v1155_v1  ;;  %v1132_v23 = vmul.f32 %v2072_v2, %v1093_v24 }
 0x205   : > { %v1655_v14 = vpop.eup %1654  ;;  %v1484_v62 = vpack.c.bf16 %v1154_v47, %v1154_v47  ;;  %v1131_v59 = vmul.f32 %v2072_v2, %v1092_v39 }
 0x206   : > { %v1657_v50 = vpop.eup %1656  ;;  %1316 = vst.msk [vmem:[%s2090_s14 + $0x34] sm:$0xf] %vm1302_vm2, %v1485_v27  ;;  %v1171_v3 = vadd.f32 %v2077_v22, %v1132_v23  ;;  %v1095_v37 = vmul.f32 %v1655_v14, %v999_v51 }
 0x207   : > { %1315 = vst.msk [vmem:[%s2090_s14 + $0x30] sm:$0xf] %vm1302_vm2, %v1484_v62  ;;  %v1170_v35 = vadd.f32 %v2077_v22, %v1131_v59  ;;  %v1094_v38 = vmul.f32 %v1657_v50, %v998_v26 }
 0x208   : > { %v1501_v53 = vpack.c.bf16 %v1171_v3, %v1171_v3  ;;  %v1134_v18 = vmul.f32 %v2072_v2, %v1095_v37 }
 0x209   : > { %v1500_v52 = vpack.c.bf16 %v1170_v35, %v1170_v35  ;;  %v1133_v63 = vmul.f32 %v2072_v2, %v1094_v38 }
 0x20a   : > { %1332 = vst.msk [vmem:[%s2090_s14 + $0x74] sm:$0xf] %vm1302_vm2, %v1501_v53  ;;  %v1173_v21 = vadd.f32 %v2077_v22, %v1134_v18 }
 0x20b   : > { %1331 = vst.msk [vmem:[%s2090_s14 + $0x70] sm:$0xf] %vm1302_vm2, %v1500_v52  ;;  %v1172_v36 = vadd.f32 %v2077_v22, %v1133_v63 }
 0x20c   : > { %v1503_v55 = vpack.c.bf16 %v1173_v21, %v1173_v21 }
 0x20d   : > { %v1502_v54 = vpack.c.bf16 %v1172_v36, %v1172_v36 }
 0x20e   : > { %1334 = vst.msk [vmem:[%s2090_s14 + $0x7c] sm:$0xf] %vm1302_vm2, %v1503_v55 }
 0x20f   : > { %1333 = vst.msk [vmem:[%s2090_s14 + $0x78] sm:$0xf] %vm1302_vm2, %v1502_v54 }
 0x210 PF: > { %s15_s18 = sadd.s32 1, %s1664_s18  }
 0x211   : > { %p12_p4 = scmp.ge.s32.totalorder %s15_s18, 4  }
 0x213   :  { %14 = sbr.rel (!%p12_p4) target bundleno = 1 (0x1), region = 70 }

</bundles_post_ra>
